<compile_context>
chip_gen: v7x
topology: tpu7x:2x2x1
jax: 0.10.0
libtpu: 0.0.40
codegen_flags: <defaults>
</compile_context>

<pallas_src>
import jax
import jax.numpy as jnp
from jax.experimental import pallas as pl
from jax.experimental.pallas import tpu as pltpu


def _prompt_linear_kernel(ego_ref, cen_ref, w1a_ref, w1b_ref, b1_ref, w2_ref,
                          b2_ref, out_ref):
    """One row-tile of the forward pass.

    ego_ref, cen_ref : [TILE_N, H]  (VMEM, streamed per grid step)
    w1a_ref, w1b_ref : [H, H]       (VMEM, resident across grid steps)
    b1_ref           : [1, H]       (VMEM, resident)
    w2_ref           : [1, H]       (VMEM, resident)
    b2_ref           : [1]          (SMEM scalar)
    out_ref          : [1, TILE_N]  (lane-dense output row)
    """
    # Linear(2H -> H) without the lane-axis concat: two accumulating MXU dots.
    h = jnp.dot(ego_ref[...], w1a_ref[...], preferred_element_type=jnp.float32)
    h = h + jnp.dot(cen_ref[...], w1b_ref[...], preferred_element_type=jnp.float32)
    h = h + b1_ref[...]
    h = jnp.maximum(h, 0.01 * h)                         # LeakyReLU(0.01)

    # Linear(H -> 1) on the MXU: contract the H axes of (1,H) x (TILE_N,H) so
    # the result is already a lane-dense (1, TILE_N) row -- no XLU reduce and
    # no sublane->lane relayout before the store.
    y = jax.lax.dot_general(
        w2_ref[...], h,
        dimension_numbers=(((1,), (1,)), ((), ())),
        preferred_element_type=jnp.float32)              # [1, TILE_N]
    y = jax.nn.sigmoid(y + b2_ref[0])
    out_ref[...] = y.astype(out_ref.dtype)


def _choose_tiling(n, hidden, in_itemsize, target_rows):
    """Pick (tile_n, padded_n, num_steps).

    * caps the tile so double-buffered streamed inputs stay within ~20 MiB of
      VMEM (safe on every generation, including v7x's 64 MiB),
    * keeps >= 2 grid steps whenever N allows it (v7x megacore sharding),
    * pads N only to tile_n * steps with steps = ceil(blocks/tile_blocks),
      bounding the padding waste to < 128 rows per grid step.
    """
    vmem_budget = 20 * 1024 * 1024
    per_row_bytes = 2 * 2 * hidden * in_itemsize          # 2 inputs x 2 buffers
    max_rows = max(128, (vmem_budget // per_row_bytes) // 128 * 128)
    target_rows = max(128, min(int(target_rows), max_rows))
    target_blocks = target_rows // 128

    padded_blocks = pl.cdiv(n, 128)
    min_steps = 2 if padded_blocks >= 2 else 1
    steps = max(min_steps, pl.cdiv(padded_blocks, target_blocks))
    tile_blocks = pl.cdiv(padded_blocks, steps)
    tile_n = tile_blocks * 128
    padded_n = tile_n * steps
    return tile_n, padded_n, steps


def prompt_linear_net(ego_nodes, central_nodes, w1_t, b1, w2, b2, *,
                      tile_n=8192):
    """PromptLinearNet.forward.

    ego_nodes, central_nodes : [N, H] (float32, or bfloat16 from the producer)
    w1_t : [2H, H]  first Linear weight, pre-transposed (W1.T)
    b1   : [H]
    w2   : [H]      second Linear weight (row of W2)
    b2   : [1]
    Returns [N, 1] float32.
    """
    n, hidden = ego_nodes.shape
    assert central_nodes.shape == (n, hidden)
    assert w1_t.shape == (2 * hidden, hidden)
    assert ego_nodes.dtype == central_nodes.dtype
    in_dtype = ego_nodes.dtype
    in_itemsize = jnp.dtype(in_dtype).itemsize

    # Split W1^T into the halves multiplying ego / central respectively; cast
    # the (tiny) weights to the streamed input dtype so bf16 inputs get a bf16
    # MXU pass (accumulation stays f32 via preferred_element_type).
    w1a_t = w1_t[:hidden, :].astype(in_dtype)
    w1b_t = w1_t[hidden:, :].astype(in_dtype)
    b1_row = jnp.asarray(b1, jnp.float32).reshape(1, hidden)
    w2_row = jnp.asarray(w2, jnp.float32).reshape(1, hidden)
    b2_s = jnp.asarray(b2, jnp.float32).reshape(1)

    tile_n, padded_n, steps = _choose_tiling(n, hidden, in_itemsize, tile_n)
    if padded_n != n:
        pad = padded_n - n
        ego_nodes = jnp.pad(ego_nodes, ((0, pad), (0, 0)))
        central_nodes = jnp.pad(central_nodes, ((0, pad), (0, 0)))

    # VMEM footprint: streamed double-buffered inputs + resident params +
    # double-buffered output row; limit derived from it (review item 3).
    streamed = 2 * 2 * tile_n * hidden * in_itemsize
    resident = 2 * (2 * hidden * hidden * in_itemsize + 2 * hidden * 4)
    out_buf = 2 * tile_n * 4
    footprint = streamed + resident + out_buf
    vmem_limit = int(min(max(2 * footprint + (4 << 20), 16 << 20), 48 << 20))

    cost = pl.CostEstimate(
        flops=4 * padded_n * hidden * hidden + 6 * padded_n * hidden,
        transcendentals=padded_n,
        bytes_accessed=(2 * padded_n * hidden * in_itemsize
                        + 2 * hidden * hidden * in_itemsize
                        + (2 * hidden + 1) * 4
                        + padded_n * 4),
    )

    out_row = pl.pallas_call(
        _prompt_linear_kernel,
        out_shape=jax.ShapeDtypeStruct((1, padded_n), jnp.float32),
        grid_spec=pltpu.PrefetchScalarGridSpec(
            num_scalar_prefetch=0,
            grid=(steps,),
            in_specs=[
                pl.BlockSpec((tile_n, hidden), lambda i: (i, 0)),    # ego (streamed)
                pl.BlockSpec((tile_n, hidden), lambda i: (i, 0)),    # central
                pl.BlockSpec((hidden, hidden), lambda i: (0, 0)),    # W1a^T (resident)
                pl.BlockSpec((hidden, hidden), lambda i: (0, 0)),    # W1b^T (resident)
                pl.BlockSpec((1, hidden), lambda i: (0, 0)),         # b1
                pl.BlockSpec((1, hidden), lambda i: (0, 0)),         # w2 row
                pl.BlockSpec(memory_space=pltpu.MemorySpace.SMEM),   # b2 scalar
            ],
            out_specs=pl.BlockSpec((1, tile_n), lambda i: (0, i)),   # lane-dense row
        ),
        compiler_params=pltpu.CompilerParams(
            dimension_semantics=("parallel",),     # shard row tiles across TCs
            vmem_limit_bytes=vmem_limit,
        ),
        cost_estimate=cost,
    )(ego_nodes, central_nodes, w1a_t, w1b_t, b1_row, w2_row, b2_s)

    # Lane-dense (1, padded_N) -> PyTorch-shaped (N, 1); wrapper-side reshape
    # is free layout plumbing.
    return out_row.reshape(padded_n, 1)[:n]


def _reference(ego, cen, w1_t, b1, w2, b2):
    x = jnp.concatenate([ego, cen], axis=1)
    h = x @ w1_t + b1.reshape(1, -1)
    h = jnp.where(h >= 0.0, h, 0.01 * h)
    y = h @ w2.reshape(-1, 1) + b2.reshape(1, 1)
    return jax.nn.sigmoid(y)


if __name__ == "__main__":
    hidden_dim = 32
    n_nodes = 8

    key = jax.random.PRNGKey(0)
    k_ego, k_cen, k_w1, k_b1, k_w2, k_b2 = jax.random.split(key, 6)

    ego_nodes = jax.random.normal(k_ego, (n_nodes, hidden_dim), dtype=jnp.float32)
    central_nodes = jax.random.normal(k_cen, (n_nodes, hidden_dim), dtype=jnp.float32)

    # Deterministic parameter init (uniform, matching torch.nn.Linear fan-in bound).
    bound1 = 1.0 / jnp.sqrt(2.0 * hidden_dim)
    w1_t = jax.random.uniform(k_w1, (2 * hidden_dim, hidden_dim),
                              minval=-bound1, maxval=bound1, dtype=jnp.float32)
    b1 = jax.random.uniform(k_b1, (hidden_dim,),
                            minval=-bound1, maxval=bound1, dtype=jnp.float32)
    bound2 = 1.0 / jnp.sqrt(float(hidden_dim))
    w2 = jax.random.uniform(k_w2, (hidden_dim,),
                            minval=-bound2, maxval=bound2, dtype=jnp.float32)
    b2 = jax.random.uniform(k_b2, (1,),
                            minval=-bound2, maxval=bound2, dtype=jnp.float32)

    out = prompt_linear_net(ego_nodes, central_nodes, w1_t, b1, w2, b2)
    out = jax.block_until_ready(out)

    ref = _reference(ego_nodes, central_nodes, w1_t, b1, w2, b2)
    assert out.shape == (n_nodes, 1), out.shape
    assert jnp.allclose(out, ref, atol=1e-5, rtol=1e-5), "mismatch vs reference"

    print("KERNEL_OK")
</pallas_src>

<mosaic_0001>
module attributes {stable_mosaic.version = 11 : i64} {
  func.func @_prompt_linear_kernel(%arg0: i32, %arg1: memref<128x32xf32, #tpu.memory_space<vmem>>, %arg2: memref<128x32xf32, #tpu.memory_space<vmem>>, %arg3: memref<32x32xf32, #tpu.memory_space<vmem>>, %arg4: memref<32x32xf32, #tpu.memory_space<vmem>>, %arg5: memref<1x32xf32, #tpu.memory_space<vmem>>, %arg6: memref<1x32xf32, #tpu.memory_space<vmem>>, %arg7: memref<1xf32, #tpu.memory_space<smem>>, %arg8: memref<1x128xf32, #tpu.memory_space<vmem>>) attributes {dimension_semantics = [#tpu.dimension_semantics<parallel>], iteration_bounds = array<i64: 1>, scalar_prefetch = 0 : i64, scratch_operands = 0 : i64, tpu.core_type = #tpu.core_type<tc>, window_params = [{transform_indices = @transform_0, window_bounds = array<i64: 128, 32>}, {transform_indices = @transform_1, window_bounds = array<i64: 128, 32>}, {pipeline_mode = #tpu.pipeline_mode<synchronous>, transform_indices = @transform_2, window_bounds = array<i64: 32, 32>}, {pipeline_mode = #tpu.pipeline_mode<synchronous>, transform_indices = @transform_3, window_bounds = array<i64: 32, 32>}, {pipeline_mode = #tpu.pipeline_mode<synchronous>, transform_indices = @transform_4, window_bounds = array<i64: 1, 32>}, {pipeline_mode = #tpu.pipeline_mode<synchronous>, transform_indices = @transform_5, window_bounds = array<i64: 1, 32>}, {transform_indices = @transform_6, window_bounds = array<i64: 1>}, {transform_indices = @transform_7, window_bounds = array<i64: 1, 128>}]} {
    %c0 = arith.constant 0 : index
    %c0_0 = arith.constant 0 : index
    %0 = vector.load %arg1[%c0, %c0_0] : memref<128x32xf32, #tpu.memory_space<vmem>>, vector<128x32xf32>
    %c0_1 = arith.constant 0 : index
    %c0_2 = arith.constant 0 : index
    %1 = vector.load %arg3[%c0_1, %c0_2] : memref<32x32xf32, #tpu.memory_space<vmem>>, vector<32x32xf32>
    %cst = arith.constant dense<0.000000e+00> : vector<128x32xf32>
    %2 = tpu.matmul %0, %1, %cst {dimension_numbers = #tpu.dot_dimension_numbers<[1], [0], [0], [1], [0, 0, 1, 1], [], []>} : vector<128x32xf32>, vector<32x32xf32>, vector<128x32xf32> -> vector<128x32xf32>
    %c0_3 = arith.constant 0 : index
    %c0_4 = arith.constant 0 : index
    %3 = vector.load %arg2[%c0_3, %c0_4] : memref<128x32xf32, #tpu.memory_space<vmem>>, vector<128x32xf32>
    %c0_5 = arith.constant 0 : index
    %c0_6 = arith.constant 0 : index
    %4 = vector.load %arg4[%c0_5, %c0_6] : memref<32x32xf32, #tpu.memory_space<vmem>>, vector<32x32xf32>
    %cst_7 = arith.constant dense<0.000000e+00> : vector<128x32xf32>
    %5 = tpu.matmul %3, %4, %cst_7 {dimension_numbers = #tpu.dot_dimension_numbers<[1], [0], [0], [1], [0, 0, 1, 1], [], []>} : vector<128x32xf32>, vector<32x32xf32>, vector<128x32xf32> -> vector<128x32xf32>
    %6 = arith.addf %2, %5 : vector<128x32xf32>
    %c0_8 = arith.constant 0 : index
    %c0_9 = arith.constant 0 : index
    %7 = vector.load %arg5[%c0_8, %c0_9] : memref<1x32xf32, #tpu.memory_space<vmem>>, vector<1x32xf32>
    %8 = vector.broadcast %7 : vector<1x32xf32> to vector<128x32xf32>
    %9 = arith.addf %6, %8 : vector<128x32xf32>
    %cst_10 = arith.constant 0.00999999977 : f32
    %10 = vector.broadcast %cst_10 : f32 to vector<128x32xf32>
    %11 = arith.mulf %10, %9 : vector<128x32xf32>
    %12 = arith.maximumf %9, %11 : vector<128x32xf32>
    %c0_11 = arith.constant 0 : index
    %c0_12 = arith.constant 0 : index
    %13 = vector.load %arg6[%c0_11, %c0_12] : memref<1x32xf32, #tpu.memory_space<vmem>>, vector<1x32xf32>
    %cst_13 = arith.constant dense<0.000000e+00> : vector<1x128xf32>
    %14 = tpu.matmul %13, %12, %cst_13 {dimension_numbers = #tpu.dot_dimension_numbers<[1], [1], [0], [0], [0, 0, 1, 0], [], []>} : vector<1x32xf32>, vector<128x32xf32>, vector<1x128xf32> -> vector<1x128xf32>
    %c0_14 = arith.constant 0 : index
    %15 = memref.load %arg7[%c0_14] : memref<1xf32, #tpu.memory_space<smem>>
    %16 = vector.broadcast %15 : f32 to vector<1x128xf32>
    %17 = arith.addf %14, %16 : vector<1x128xf32>
    %18 = arith.negf %17 : vector<1x128xf32>
    %19 = math.exp %18 : vector<1x128xf32>
    %cst_15 = arith.constant 1.000000e+00 : f32
    %20 = vector.broadcast %cst_15 : f32 to vector<1x128xf32>
    %21 = arith.addf %20, %19 : vector<1x128xf32>
    %22 = arith.divf %20, %21 : vector<1x128xf32>
    %c0_16 = arith.constant 0 : index
    %c0_17 = arith.constant 0 : index
    %23 = vector.load %arg8[%c0_16, %c0_17] : memref<1x128xf32, #tpu.memory_space<vmem>>, vector<1x128xf32>
    tpu.vector_store %arg8[%c0_16, %c0_17], %22 {strides = array<i32>} : memref<1x128xf32, #tpu.memory_space<vmem>>, vector<1x128xf32>,
    return
  }
  func.func @transform_0(%arg0: i32) -> (i32, i32) {
    %c0_i32 = arith.constant 0 : i32
    %c0_i32_0 = arith.constant 0 : i32
    return %arg0, %c0_i32 : i32, i32
  }
  func.func @transform_1(%arg0: i32) -> (i32, i32) {
    %c0_i32 = arith.constant 0 : i32
    %c0_i32_0 = arith.constant 0 : i32
    return %arg0, %c0_i32 : i32, i32
  }
  func.func @transform_2(%arg0: i32) -> (i32, i32) {
    %c0_i32 = arith.constant 0 : i32
    %c0_i32_0 = arith.constant 0 : i32
    %c0_i32_1 = arith.constant 0 : i32
    return %c0_i32, %c0_i32_0 : i32, i32
  }
  func.func @transform_3(%arg0: i32) -> (i32, i32) {
    %c0_i32 = arith.constant 0 : i32
    %c0_i32_0 = arith.constant 0 : i32
    %c0_i32_1 = arith.constant 0 : i32
    return %c0_i32, %c0_i32_0 : i32, i32
  }
  func.func @transform_4(%arg0: i32) -> (i32, i32) {
    %c0_i32 = arith.constant 0 : i32
    %c0_i32_0 = arith.constant 0 : i32
    %c0_i32_1 = arith.constant 0 : i32
    return %c0_i32, %c0_i32_0 : i32, i32
  }
  func.func @transform_5(%arg0: i32) -> (i32, i32) {
    %c0_i32 = arith.constant 0 : i32
    %c0_i32_0 = arith.constant 0 : i32
    %c0_i32_1 = arith.constant 0 : i32
    return %c0_i32, %c0_i32_0 : i32, i32
  }
  func.func @transform_6(%arg0: i32) -> i32 {
    %c0_i32 = arith.constant 0 : i32
    %c0_i32_0 = arith.constant 0 : i32
    return %c0_i32 : i32
  }
  func.func @transform_7(%arg0: i32) -> (i32, i32) {
    %c0_i32 = arith.constant 0 : i32
    %c0_i32_0 = arith.constant 0 : i32
    return %c0_i32, %arg0 : i32, i32
  }
}

</mosaic_0001>

<bundles_post_ra>
// kernel: tpu_custom_call.1
= control target key start
LH: loop header
LB: loop body
LE: loop exit
PB: predicated region body
PF: predicated region fallthrough
CT: control target
= control target key end

     0   :  { %vm68_vm0 = vcmask 261120   ;;  %s1224_s0 = inlined_call_operand.vmem [shape: f32[128,32], index: 0, kind: input, shape index: {}]   ;;  %s1225_s1 = inlined_call_operand.vmem [shape: f32[128,32], index: 1, kind: input, shape index: {}]   ;;  %s1226_s2 = inlined_call_operand.vmem [shape: f32[32,32], index: 2, kind: input, shape index: {}]   ;;  %s1227_s3 = inlined_call_operand.vmem [shape: f32[32,32], index: 3, kind: input, shape index: {}]   ;;  %s1228_s4 = inlined_call_operand.vmem [shape: f32[1,32], index: 4, kind: input, shape index: {}]   ;;  %s1229_s5 = inlined_call_operand.vmem [shape: f32[1,32], index: 5, kind: input, shape index: {}]   ;;  %s1230_s6 = inlined_call_operand.<no memory space> [shape: f32[1], index: 6, kind: input, shape index: {}]   ;;  %s1231_s7 = inlined_call_operand.hbm [shape: f32[1,128], index: 7, kind: output, shape index: {}]  }
   0x1   :  { %v64_v0 = vld [vmem:[%s1227_s3] sm:$0xff]  ;;  %v65_v1 = vld [vmem:[%s1227_s3 + $0x8] sm:$0xff]  ;;  %v66_v2 = vld [vmem:[%s1227_s3 + $0x10] sm:$0xff] }
   0x2   :  { %v862_v3 = vpack.c.bf16 %v65_v1, %v64_v0  ;;  %v67_v4 = vld [vmem:[%s1227_s3 + $0x18] sm:$0xff]  ;;  %v48_v5 = vld [vmem:[%s1225_s1] sm:$0xff]  ;;  %v45_v8 = vld [vmem:[%s1226_s2 + $0x8] sm:$0xff] }
   0x3   :  { %v866_v6 = vpack.c.bf16 %v67_v4, %v66_v2  ;;  %771 = vmatprep.mubr.msk.f32.mxu0 %vm68_vm0, %v48_v5  ;;  %v44_v7 = vld [vmem:[%s1226_s2] sm:$0xff]  ;;  %v46_v10 = vld [vmem:[%s1226_s2 + $0x10] sm:$0xff]  ;;  %v47_v11 = vld [vmem:[%s1226_s2 + $0x18] sm:$0xff] }
   0x4   :  { %863 = vmatprep.subr.bf16.mxu0 %v862_v3  ;;  %v870_v9 = vpack.c.bf16 %v45_v8, %v44_v7  ;;  %v49_v12 = vld [vmem:[%s1225_s1 + $0x8] sm:$0xff]  ;;  %v50_v13 = vld [vmem:[%s1225_s1 + $0x10] sm:$0xff]  ;;  %v874_v14 = vpack.c.bf16 %v47_v11, %v46_v10  ;;  %v51_v15 = vld [vmem:[%s1225_s1 + $0x18] sm:$0xff] }
   0x5   :  { %865 = vmatpush3.bf16.msra.mxu0 %v862_v3  ;;  %v52_v16 = vld [vmem:[%s1225_s1 + $0x20] sm:$0xff] }
   0x6   :  { %867 = vmatprep.subr.bf16.mxu0 %v866_v6 }
   0x9   :  { %869 = vmatpush3.bf16.msra.mxu0 %v866_v6 }
   0xa   :  { %871 = vmatprep.subr.bf16.mxu0 %v870_v9 }
   0xc   :  { %772 = vmatmul.mubr.msk.f32.vlgmr.msra.gmra.mrb[0].mxu0 %vm68_vm0, %v49_v12 }
   0xd   :  { %873 = vmatpush3.bf16.msra.mxu0 %v870_v9  ;;  %774 = vmatprep.mubr.msk.f32.mxu0 %vm68_vm0, %v50_v13 }
   0xe   :  { %875 = vmatprep.subr.bf16.mxu0 %v874_v14 }
   0xf   :  { %13 = vsyncpa [#allocation4], 0  ;;  %v53_v17 = vld [vmem:[%s1225_s1 + $0x28] sm:$0xff]  ;;  %v54_v18 = vld [vmem:[%s1225_s1 + $0x30] sm:$0xff]  ;;  %v958_v44 = vmov 0.0|0.0   ;;  %vm959_vm1 = vmmov 0  }
  0x10   :  { %775 = vmatmul.mubr.msk.f32.gmra.mrb[2].mxu0 %vm68_vm0, %v51_v15  ;;  %v55_v19 = vld [vmem:[%s1225_s1 + $0x38] sm:$0xff]  ;;  %v56_v20 = vld [vmem:[%s1225_s1 + $0x40] sm:$0xff]  ;;  %v57_v21 = vld [vmem:[%s1225_s1 + $0x48] sm:$0xff]  ;;  %878 = vmatprep.subr.bf16.mxu1 %v958_v44  ;;  %v960_v45 = vmov 0.0   ;;  %s961_s8 = smov [#allocation3]  }
  0x11   :  { %777 = vmatprep.mubr.msk.f32.mxu0 %vm68_vm0, %v52_v16  ;;  %877 = vmatpush3.bf16.msra.mxu0 %v874_v14  ;;  %v58_v22 = vld [vmem:[%s1225_s1 + $0x50] sm:$0xff]  ;;  %v59_v23 = vld [vmem:[%s1225_s1 + $0x58] sm:$0xff]  ;;  %v60_v24 = vld [vmem:[%s1225_s1 + $0x60] sm:$0xff]  ;;  %s647_s9 = sshll.u32 %s961_s8, 4  ;;  %s648_s9 = int_to_ptr.vmem [resolvable:$true] %s647_s9 }
  0x12   :  { %v61_v25 = vld [vmem:[%s1225_s1 + $0x68] sm:$0xff]  ;;  %v62_v26 = vld [vmem:[%s1225_s1 + $0x70] sm:$0xff]  ;;  %v63_v27 = vld [vmem:[%s1225_s1 + $0x78] sm:$0xff]  ;;  %859 = vmatprep.mubr.msk.f32.mxu1 %vm959_vm1, %v960_v45  ;;  %s938_s10 = scalar_lea.vmem %s648_s9, 32  ;;  %p939_p1 = scmp.lt.s32.totalorder %s648_s9, %s648_s9 }
  0x13   :  { %v28_v28 = vld [vmem:[%s1224_s0] sm:$0xff]  ;;  %v29_v29 = vld [vmem:[%s1224_s0 + $0x8] sm:$0xff]  ;;  %v30_v30 = vld [vmem:[%s1224_s0 + $0x10] sm:$0xff] }
  0x14   :  { %778 = vmatmul.mubr.msk.f32.gmra.mrb[4].mxu0 %vm68_vm0, %v53_v17  ;;  %v31_v31 = vld [vmem:[%s1224_s0 + $0x18] sm:$0xff]  ;;  %v32_v32 = vld [vmem:[%s1224_s0 + $0x20] sm:$0xff]  ;;  %v33_v33 = vld [vmem:[%s1224_s0 + $0x28] sm:$0xff] }
  0x15   :  { %780 = vmatprep.mubr.msk.f32.mxu0 %vm68_vm0, %v54_v18  ;;  %v34_v34 = vld [vmem:[%s1224_s0 + $0x30] sm:$0xff]  ;;  %v35_v35 = vld [vmem:[%s1224_s0 + $0x38] sm:$0xff]  ;;  %v36_v36 = vld [vmem:[%s1224_s0 + $0x40] sm:$0xff] }
  0x16   :  { %v37_v37 = vld [vmem:[%s1224_s0 + $0x48] sm:$0xff]  ;;  %v38_v38 = vld [vmem:[%s1224_s0 + $0x50] sm:$0xff]  ;;  %v39_v39 = vld [vmem:[%s1224_s0 + $0x58] sm:$0xff] }
  0x17   :  { %v40_v40 = vld [vmem:[%s1224_s0 + $0x60] sm:$0xff]  ;;  %v41_v41 = vld [vmem:[%s1224_s0 + $0x68] sm:$0xff]  ;;  %v42_v42 = vld [vmem:[%s1224_s0 + $0x70] sm:$0xff] }
  0x18   :  { %781 = vmatmul.mubr.msk.f32.gmra.mrb[6].mxu0 %vm68_vm0, %v55_v19  ;;  %v43_v43 = vld [vmem:[%s1224_s0 + $0x78] sm:$0xff]  ;;  %v1158_v46 = vld [vmem:[%s1228_s4] ss:$0 sm:$0xff]  ;;  %vm1166_vm2 = vmpackc.low %vm68_vm0, %vm68_vm0 }
  0x19   :  { %783 = vmatprep.mubr.msk.f32.mxu0 %vm68_vm0, %v56_v20 }
  0x1c   :  { %784 = vmatmul.mubr.msk.f32.gmra.mrb[8].mxu0 %vm68_vm0, %v57_v21 }
  0x1d   :  { %786 = vmatprep.mubr.msk.f32.mxu0 %vm68_vm0, %v58_v22 }
  0x20   :  { %787 = vmatmul.mubr.msk.f32.gmra.mrb[10].mxu0 %vm68_vm0, %v59_v23 }
  0x21   :  { %789 = vmatprep.mubr.msk.f32.mxu0 %vm68_vm0, %v60_v24 }
  0x24   :  { %790 = vmatmul.mubr.msk.f32.gmra.mrb[12].mxu0 %vm68_vm0, %v61_v25 }
  0x25   :  { %792 = vmatprep.mubr.msk.f32.mxu0 %vm68_vm0, %v62_v26 }
  0x28   :  { %793 = vmatmul.mubr.msk.f32.gmra.mrb[14].mxu0 %vm68_vm0, %v63_v27 }
  0x29   :  { %803 = vmatprep.mubr.msk.f32.mxu0 %vm68_vm0, %v28_v28 }
  0x2c   :  { %804 = vmatmul.mubr.msk.f32.vlgmr.msra.gmra.mrb[0].mxu0 %vm68_vm0, %v29_v29 }
  0x2d   :  { %806 = vmatprep.mubr.msk.f32.mxu0 %vm68_vm0, %v30_v30 }
  0x30   :  { %807 = vmatmul.mubr.msk.f32.gmra.mrb[2].mxu0 %vm68_vm0, %v31_v31 }
  0x31   :  { %809 = vmatprep.mubr.msk.f32.mxu0 %vm68_vm0, %v32_v32 }
  0x34   :  { %810 = vmatmul.mubr.msk.f32.gmra.mrb[4].mxu0 %vm68_vm0, %v33_v33 }
  0x35   :  { %812 = vmatprep.mubr.msk.f32.mxu0 %vm68_vm0, %v34_v34 }
  0x38   :  { %813 = vmatmul.mubr.msk.f32.gmra.mrb[6].mxu0 %vm68_vm0, %v35_v35 }
  0x39   :  { %815 = vmatprep.mubr.msk.f32.mxu0 %vm68_vm0, %v36_v36 }
  0x3c   :  { %816 = vmatmul.mubr.msk.f32.gmra.mrb[8].mxu0 %vm68_vm0, %v37_v37 }
  0x3d   :  { %818 = vmatprep.mubr.msk.f32.mxu0 %vm68_vm0, %v38_v38 }
  0x40   :  { %819 = vmatmul.mubr.msk.f32.gmra.mrb[10].mxu0 %vm68_vm0, %v39_v39 }
  0x41   :  { %821 = vmatprep.mubr.msk.f32.mxu0 %vm68_vm0, %v40_v40 }
  0x44   :  { %822 = vmatmul.mubr.msk.f32.gmra.mrb[12].mxu0 %vm68_vm0, %v41_v41 }
  0x45   :  { %824 = vmatprep.mubr.msk.f32.mxu0 %vm68_vm0, %v42_v42 }
  0x48   :  { %825 = vmatmul.mubr.msk.f32.gmra.mrb[14].mxu0 %vm68_vm0, %v43_v43 }
  0xff   :  { %v805_v47 = vpop.f32.mrb[0].mxu0 }
 0x100   :  { %v463_v48 = vadd.f32 %v805_v47, %v1158_v46  ;;  %v376_v49 = vpop.f32.mrb[1].mxu0 }
 0x101   :  { %v462_v50 = vadd.f32 %v1158_v46, %v376_v49 }
 0x102   :  { %v479_v51 = vmul.f32 0.01, %v463_v48 }
 0x103   :  { %v478_v52 = vmul.f32 0.01, %v462_v50  ;;  %v808_v53 = vpop.f32.mrb[2].mxu0 }
 0x104   :  { %v495_v54 = vmax.f32 %v463_v48, %v479_v51  ;;  %v465_v55 = vadd.f32 %v808_v53, %v1158_v46  ;;  %v386_v56 = vpop.f32.mrb[3].mxu0 }
 0x105   :  { %v494_v57 = vmax.f32 %v462_v50, %v478_v52  ;;  %v464_v58 = vadd.f32 %v1158_v46, %v386_v56 }
 0x106   :  { %v481_v59 = vmul.f32 0.01, %v465_v55 }
 0x107   :  { %v480_v61 = vmul.f32 0.01, %v464_v58  ;;  %v811_v62 = vpop.f32.mrb[4].mxu0  ;;  %v879_v63 = vpack.c.bf16 %v495_v54, %v494_v57 }
 0x108   :  { %v497_v0 = vmax.f32 %v465_v55, %v481_v59  ;;  %v467_v1 = vadd.f32 %v811_v62, %v1158_v46  ;;  %v396_v2 = vpop.f32.mrb[5].mxu0 }
 0x109   :  { %v496_v3 = vmax.f32 %v464_v58, %v480_v61  ;;  %v466_v4 = vadd.f32 %v1158_v46, %v396_v2  ;;  %881 = vmatpush3.bf16.xpose.msk.msra.mxu1 %vm1166_vm2, %v879_v63  ;;  %v512_v58 = vstv %s1230_s6 }
 0x10a   :  { %v483_v5 = vmul.f32 0.01, %v467_v1  ;;  %882 = vmatprep.subr.bf16.mxu1 %v958_v44 }
 0x10b   :  { %v883_v6 = vpack.c.bf16 %v497_v0, %v496_v3  ;;  %v482_v7 = vmul.f32 0.01, %v466_v4  ;;  %v814_v8 = vpop.f32.mrb[6].mxu0 }
 0x10c   :  { %v499_v9 = vmax.f32 %v467_v1, %v483_v5  ;;  %v469_v10 = vadd.f32 %v814_v8, %v1158_v46  ;;  %v406_v11 = vpop.f32.mrb[7].mxu0 }
 0x10d   :  { %v498_v12 = vmax.f32 %v466_v4, %v482_v7  ;;  %v468_v13 = vadd.f32 %v1158_v46, %v406_v11 }
 0x10e   :  { %v485_v14 = vmul.f32 0.01, %v469_v10 }
 0x10f   :  { %v887_v15 = vpack.c.bf16 %v499_v9, %v498_v12  ;;  %v484_v16 = vmul.f32 0.01, %v468_v13  ;;  %v817_v17 = vpop.f32.mrb[8].mxu0 }
 0x110   :  { %v501_v18 = vmax.f32 %v469_v10, %v485_v14  ;;  %v471_v19 = vadd.f32 %v817_v17, %v1158_v46  ;;  %v416_v20 = vpop.f32.mrb[9].mxu0 }
 0x111   :  { %v500_v21 = vmax.f32 %v468_v13, %v484_v16  ;;  %v470_v22 = vadd.f32 %v1158_v46, %v416_v20  ;;  %885 = vmatpush3.bf16.xpose.msk.msra.mxu1 %vm1166_vm2, %v883_v6 }
 0x112   :  { %v487_v23 = vmul.f32 0.01, %v471_v19  ;;  %886 = vmatprep.subr.bf16.mxu1 %v958_v44 }
 0x113   :  { %v891_v24 = vpack.c.bf16 %v501_v18, %v500_v21  ;;  %v486_v25 = vmul.f32 0.01, %v470_v22  ;;  %v820_v26 = vpop.f32.mrb[10].mxu0 }
 0x114   :  { %v503_v27 = vmax.f32 %v471_v19, %v487_v23  ;;  %v473_v28 = vadd.f32 %v820_v26, %v1158_v46  ;;  %v426_v29 = vpop.f32.mrb[11].mxu0 }
 0x115   :  { %v502_v30 = vmax.f32 %v470_v22, %v486_v25  ;;  %v472_v31 = vadd.f32 %v1158_v46, %v426_v29 }
 0x116   :  { %v489_v32 = vmul.f32 0.01, %v473_v28 }
 0x117   :  { %v895_v33 = vpack.c.bf16 %v503_v27, %v502_v30  ;;  %v488_v34 = vmul.f32 0.01, %v472_v31  ;;  %v823_v35 = vpop.f32.mrb[12].mxu0 }
 0x118   :  { %v505_v36 = vmax.f32 %v473_v28, %v489_v32  ;;  %v475_v37 = vadd.f32 %v823_v35, %v1158_v46  ;;  %v436_v38 = vpop.f32.mrb[13].mxu0 }
 0x119   :  { %v504_v39 = vmax.f32 %v472_v31, %v488_v34  ;;  %v474_v40 = vadd.f32 %v1158_v46, %v436_v38  ;;  %889 = vmatpush3.bf16.xpose.msk.msra.mxu1 %vm1166_vm2, %v887_v15 }
 0x11a   :  { %v491_v41 = vmul.f32 0.01, %v475_v37  ;;  %890 = vmatprep.subr.bf16.mxu1 %v958_v44 }
 0x11b   :  { %v899_v42 = vpack.c.bf16 %v505_v36, %v504_v39  ;;  %v490_v43 = vmul.f32 0.01, %v474_v40  ;;  %v826_v45 = vpop.f32.mrb[14].mxu0 }
 0x11c   :  { %v507_v47 = vmax.f32 %v475_v37, %v491_v41  ;;  %v477_v48 = vadd.f32 %v826_v45, %v1158_v46  ;;  %v446_v49 = vpop.f32.mrb[15].mxu0 }
 0x11d   :  { %v506_v50 = vmax.f32 %v474_v40, %v490_v43  ;;  %v476_v51 = vadd.f32 %v1158_v46, %v446_v49  ;;  %v510_v46 = vld [vmem:[%s1229_s5] sm:$0x1]  ;;  %s934_s5 = scalar_lea.vmem %s648_s9, 16 }
 0x11e   :  { %v493_v52 = vmul.f32 0.01, %v477_v48  ;;  %p935_p0 = scmp.ne.s32.totalorder %s648_s9, %s934_s5  ;;  %p940_p2 = scmp.lt.s32.totalorder %s938_s10, %s934_s5 }
 0x11f   :  { %v903_v53 = vpack.c.bf16 %v507_v47, %v506_v50  ;;  %v492_v54 = vmul.f32 0.01, %v476_v51 }
 0x120   :  { %v509_v55 = vmax.f32 %v477_v48, %v493_v52  ;;  %p941_p3 = por %p940_p2, %p939_p1 }
 0x121   :  { %v508_v56 = vmax.f32 %v476_v51, %v492_v54  ;;  %893 = vmatpush3.bf16.xpose.msk.msra.mxu1 %vm1166_vm2, %v891_v24 }
 0x122   :  { %894 = vmatprep.subr.bf16.mxu1 %v958_v44  ;;  %p942_p4 = pnand %p941_p3, %p935_p0 }
 0x123   :  { %v907_v57 = vpack.c.bf16 %v509_v55, %v508_v56 }
 0x129   :  { %897 = vmatpush3.bf16.xpose.msk.msra.mxu1 %vm1166_vm2, %v895_v33 }
 0x12a   :  { %898 = vmatprep.subr.bf16.mxu1 %v958_v44 }
 0x131   :  { %901 = vmatpush3.bf16.xpose.msk.msra.mxu1 %vm1166_vm2, %v899_v42 }
 0x132   :  { %902 = vmatprep.subr.bf16.mxu1 %v958_v44 }
 0x139   :  { %905 = vmatpush3.bf16.xpose.msk.msra.mxu1 %vm1166_vm2, %v903_v53 }
 0x13a   :  { %906 = vmatprep.subr.bf16.mxu1 %v958_v44 }
 0x141   :  { %909 = vmatpush3.bf16.xpose.msk.msra.mxu1 %vm1166_vm2, %v907_v57 }
 0x148   :  { %860 = vmatmul.mubr.msk.f32.vlgmr.msra.gmra.mrb[0].mxu1 %vm68_vm0, %v510_v46 }
 0x21b   :  { %v630_v59 = vpop.f32.mrb[0].mxu1 }
 0x21c   :  { %v631_v61 = vadd.f32 %v630_v59, %v512_v58  ;;  %v861_v62 = vpop.f32.mrb[1].mxu1 }
 0x21e   :  { %v705_v63 = vmul.f32 -1.442695, %v631_v61 }
 0x220   :  { %930 = vpow2.f32 %v705_v63 }
 0x22a   :  { %v931_v0 = vpop.eup %930 }
 0x22b   :  { %v637_v44 = vadd.f32 1.0, %v931_v0 }
 0x22d   :  { %932 = vrcp.f32 %v637_v44 }
 0x237   :  { %v933_v60 = vpop.eup %932 }
 0x238   :  { %640 = vst [vmem:[#allocation3] sm:$0x1] %v933_v60 }
 0x239   :  { %945 = shalt.err (!%p942_p4)
}
 0x23a   :  { %s946_s12 = scalar_lea.hbm %s1231_s7, 16 }
 0x23b   :  { %p947_p5 = scmp.ne.s32.totalorder %s1231_s7, %s946_s12  ;;  %p950_p6 = scmp.lt.u32.totalorder %s946_s12, %s1231_s7 }
 0x23d   :  { %p952_p7 = pnand %p950_p6, %p947_p5 }
 0x23f   :  { %955 = shalt.err (!%p952_p7)
}
 0x240   :  { %650 = dma.vmem_to_hbm [thread:$0]  %s648_s9, 16, %s1231_s7, [#allocation4]  }
 0x241   :  { %956 = dma.done.wait [#allocation4], 16  }
 0x242   :  { %957 = vsyncadd [#allocation4], 4294967280 }
 0x243   :  { %654 = vsyncpa [#allocation4], 1 }

</bundles_post_ra>
